<compile_context>
chip_gen: v5e
topology: v5e:2x2
jax: 0.10.0
libtpu: 0.0.40
codegen_flags: <defaults>
</compile_context>

<pallas_src>
import jax
import jax.numpy as jnp
from jax.experimental import pallas as pl
from jax.experimental.pallas import tpu as pltpu
import numpy as np


def _g_vector_kernel(y_ref, w_ref, b_ref, o_ref):
    # y_ref: (tile_m, 128) f32 -- 8 batch rows x 16 features packed per row
    # w_ref: (128, 8)      f32 -- block-diagonal replicated weight (VMEM resident)
    # b_ref: (1,)          f32 -- bias scalar in SMEM
    # o_ref: (tile_m, 8)   f32 -- 8 batch outputs per packed row
    acc = jnp.dot(y_ref[...], w_ref[...], preferred_element_type=jnp.float32)
    o_ref[...] = (acc + b_ref[0]).astype(o_ref.dtype)


def g_vector_forward(y, weight, bias, *, max_tile_m=2048):
    """Equivalent of nn.Linear(16, 1): returns y @ weight.T + bias.

    y:      (..., 16) float32
    weight: (1, 16)   float32 (PyTorch layout)
    bias:   (1,)      float32
    returns (..., 1)  float32
    """
    lead_shape = y.shape[:-1]
    K = y.shape[-1]
    assert K == 16, "g_vector expects 16 input features"
    y = y.reshape(-1, K)
    B = y.shape[0]

    # --- wrapper-side layout plumbing (free / tiny XLA glue) -----------------
    # Pad batch to a multiple of 64 so the packed M dimension is a multiple
    # of 8 (sublane granularity).  Only copies when B is not already aligned.
    B_pad = ((B + 63) // 64) * 64
    if B_pad != B:
        y = jnp.pad(y, ((0, B_pad - B), (0, 0)))
    M = B_pad // 8                        # packed rows, multiple of 8
    y2 = y.reshape(M, 128)                # contiguous row-major -> free reshape

    # Block-diagonal weight: w_bd[16*i + k, j] = (i == j) * weight[0, k]
    w_bd = jnp.kron(jnp.eye(8, dtype=y.dtype), weight.T.astype(y.dtype))  # (128, 8)
    b1 = bias.reshape((1,)).astype(y.dtype)                               # SMEM scalar

    # Tile the packed-row dimension with big tiles for DMA efficiency.
    tile_m = min(max_tile_m, M)           # M is a multiple of 8, so tile_m is too
    # For bigger batches prefer >=2 grid steps so the "parallel" batch axis
    # can shard across both TensorCores on v7x (per-step overhead ~0.35 us).
    if M >= 256 and pl.cdiv(M, tile_m) < 2:
        tile_m = (((M + 1) // 2 + 7) // 8) * 8
    grid_m = pl.cdiv(M, tile_m)           # ragged last tile handled by Pallas

    out = pl.pallas_call(
        _g_vector_kernel,
        out_shape=jax.ShapeDtypeStruct((M, 8), y.dtype),
        grid_spec=pltpu.PrefetchScalarGridSpec(
            num_scalar_prefetch=0,
            grid=(grid_m,),
            in_specs=[
                # lane-dense input tile, pipelined over the batch
                pl.BlockSpec((tile_m, 128), lambda i: (i, 0)),
                # weight block identical for every grid step -> stays resident
                pl.BlockSpec((128, 8), lambda i: (0, 0)),
                # bias as an SMEM scalar (no padded VMEM tile, no extra DMA)
                pl.BlockSpec(memory_space=pltpu.MemorySpace.SMEM),
            ],
            out_specs=pl.BlockSpec((tile_m, 8), lambda i: (i, 0)),
        ),
        compiler_params=pltpu.CompilerParams(
            # pure batch parallelism: shards across both TCs on v7x
            dimension_semantics=("parallel",),
        ),
        cost_estimate=pl.CostEstimate(
            flops=2 * B_pad * K,
            transcendentals=0,
            bytes_accessed=B_pad * K * 4 + B_pad * 4 + 128 * 8 * 4 + 4,
        ),
    )(y2, w_bd, b1)

    # (M, 8) row-major is exactly the flat batch order -> free reshape; drop
    # the padded rows and restore the original leading dims.
    return out.reshape(B_pad, 1)[:B].reshape(lead_shape + (1,))


if __name__ == "__main__":
    key = jax.random.PRNGKey(0)
    k_y, k_w, k_b = jax.random.split(key, 3)

    B, K = 8, 16                          # small batch of 16-dim vectors
    y = jax.random.normal(k_y, (B, K), dtype=jnp.float32)

    # Deterministic parameter init (mimics nn.Linear uniform(-1/sqrt(16), 1/sqrt(16)))
    bound = 1.0 / np.sqrt(K)
    weight = jax.random.uniform(k_w, (1, K), minval=-bound, maxval=bound,
                                dtype=jnp.float32)
    bias = jax.random.uniform(k_b, (1,), minval=-bound, maxval=bound,
                              dtype=jnp.float32)

    out = jax.block_until_ready(g_vector_forward(y, weight, bias))
    ref = y @ weight.T + bias
    np.testing.assert_allclose(np.asarray(out), np.asarray(ref),
                               rtol=1e-5, atol=1e-5)

    # Larger, non-aligned batch: exercises padding, ragged last tile and the
    # 2-way grid split for megacore.
    B2 = 10000
    y_big = jax.random.normal(k_y, (B2, K), dtype=jnp.float32)
    out2 = jax.block_until_ready(g_vector_forward(y_big, weight, bias))
    ref2 = y_big @ weight.T + bias
    np.testing.assert_allclose(np.asarray(out2), np.asarray(ref2),
                               rtol=1e-5, atol=1e-5)

    # Arbitrary leading dims (nn.Linear broadcasts over them).
    y_nd = jax.random.normal(k_b, (2, 5, K), dtype=jnp.float32)
    out3 = jax.block_until_ready(g_vector_forward(y_nd, weight, bias))
    ref3 = y_nd @ weight.T + bias
    np.testing.assert_allclose(np.asarray(out3), np.asarray(ref3),
                               rtol=1e-5, atol=1e-5)

    print("KERNEL_OK")
</pallas_src>

<mosaic_0001>
module attributes {stable_mosaic.version = 11 : i64} {
  func.func @_g_vector_kernel(%arg0: i32, %arg1: memref<8x128xf32, #tpu.memory_space<vmem>>, %arg2: memref<128x8xf32, #tpu.memory_space<vmem>>, %arg3: memref<1xf32, #tpu.memory_space<smem>>, %arg4: memref<8x8xf32, #tpu.memory_space<vmem>>) attributes {dimension_semantics = [#tpu.dimension_semantics<parallel>], iteration_bounds = array<i64: 1>, scalar_prefetch = 0 : i64, scratch_operands = 0 : i64, tpu.core_type = #tpu.core_type<tc>, window_params = [{transform_indices = @transform_0, window_bounds = array<i64: 8, 128>}, {pipeline_mode = #tpu.pipeline_mode<synchronous>, transform_indices = @transform_1, window_bounds = array<i64: 128, 8>}, {transform_indices = @transform_2, window_bounds = array<i64: 1>}, {transform_indices = @transform_3, window_bounds = array<i64: 8, 8>}]} {
    %c0 = arith.constant 0 : index
    %c0_0 = arith.constant 0 : index
    %0 = vector.load %arg1[%c0, %c0_0] : memref<8x128xf32, #tpu.memory_space<vmem>>, vector<8x128xf32>
    %c0_1 = arith.constant 0 : index
    %c0_2 = arith.constant 0 : index
    %1 = vector.load %arg2[%c0_1, %c0_2] : memref<128x8xf32, #tpu.memory_space<vmem>>, vector<128x8xf32>
    %cst = arith.constant dense<0.000000e+00> : vector<8x8xf32>
    %2 = tpu.matmul %0, %1, %cst {dimension_numbers = #tpu.dot_dimension_numbers<[1], [0], [0], [1], [0, 0, 1, 1], [], []>} : vector<8x128xf32>, vector<128x8xf32>, vector<8x8xf32> -> vector<8x8xf32>
    %c0_3 = arith.constant 0 : index
    %3 = memref.load %arg3[%c0_3] : memref<1xf32, #tpu.memory_space<smem>>
    %4 = vector.broadcast %3 : f32 to vector<8x8xf32>
    %5 = arith.addf %2, %4 : vector<8x8xf32>
    %c0_4 = arith.constant 0 : index
    %c0_5 = arith.constant 0 : index
    %6 = vector.load %arg4[%c0_4, %c0_5] : memref<8x8xf32, #tpu.memory_space<vmem>>, vector<8x8xf32>
    tpu.vector_store %arg4[%c0_4, %c0_5], %5 {strides = array<i32>} : memref<8x8xf32, #tpu.memory_space<vmem>>, vector<8x8xf32>,
    return
  }
  func.func @transform_0(%arg0: i32) -> (i32, i32) {
    %c0_i32 = arith.constant 0 : i32
    %c0_i32_0 = arith.constant 0 : i32
    return %arg0, %c0_i32 : i32, i32
  }
  func.func @transform_1(%arg0: i32) -> (i32, i32) {
    %c0_i32 = arith.constant 0 : i32
    %c0_i32_0 = arith.constant 0 : i32
    %c0_i32_1 = arith.constant 0 : i32
    return %c0_i32, %c0_i32_0 : i32, i32
  }
  func.func @transform_2(%arg0: i32) -> i32 {
    %c0_i32 = arith.constant 0 : i32
    %c0_i32_0 = arith.constant 0 : i32
    return %c0_i32 : i32
  }
  func.func @transform_3(%arg0: i32) -> (i32, i32) {
    %c0_i32 = arith.constant 0 : i32
    %c0_i32_0 = arith.constant 0 : i32
    return %arg0, %c0_i32 : i32, i32
  }
}

</mosaic_0001>

<bundles_post_ra>
// kernel: tpu_custom_call.1
= control target key start
LH: loop header
LB: loop body
LE: loop exit
PB: predicated region body
PF: predicated region fallthrough
CT: control target
= control target key end

     0   :  { %s178_s0 = inlined_call_operand.vmem [shape: f32[8,128], index: 0, kind: input, shape index: {}]   ;;  %s179_s1 = inlined_call_operand.vmem [shape: f32[128,8], index: 1, kind: input, shape index: {}]   ;;  %s180_s2 = inlined_call_operand.<no memory space> [shape: f32[1], index: 2, kind: input, shape index: {}]   ;;  %s181_s3 = inlined_call_operand.hbm [shape: f32[8,8], index: 3, kind: output, shape index: {}]  }
   0x1   :  { %v32_v0 = vld [vmem:[%s179_s1 + $0x78] sm:$0xff]  ;;  %v31_v1 = vld [vmem:[%s179_s1 + $0x70] sm:$0xff]  ;;  %v30_v2 = vld [vmem:[%s179_s1 + $0x68] sm:$0xff] }
   0x2   :  { %35 = vmatpush.msra.mxu0 %v32_v0  ;;  %v29_v3 = vld [vmem:[%s179_s1 + $0x60] sm:$0xff] }
   0x4   :  { %36 = vmatpush.msra.mxu0 %v31_v1 }
   0x6   :  { %37 = vmatpush.msra.mxu0 %v30_v2 }
   0x7   :  { %9 = vsyncpa [#allocation4], 0  ;;  %v28_v4 = vld [vmem:[%s179_s1 + $0x58] sm:$0xff]  ;;  %v27_v5 = vld [vmem:[%s179_s1 + $0x50] sm:$0xff]  ;;  %v34_v17 = vstv %s180_s2  ;;  %s100_s21 = smov [#allocation3]   ;;  %s64_s25 = sshll.u32 %s181_s3, 4  ;;  %s65_s25 = int_to_ptr.hbm [resolvable:$true] %s64_s25 }
   0x8   :  { %38 = vmatpush.msra.mxu0 %v29_v3  ;;  %v26_v6 = vld [vmem:[%s179_s1 + $0x48] sm:$0xff]  ;;  %v25_v7 = vld [vmem:[%s179_s1 + $0x40] sm:$0xff]  ;;  %v24_v8 = vld [vmem:[%s179_s1 + $0x38] sm:$0xff]  ;;  %s62_s22 = sshll.u32 %s100_s21, 4  ;;  %vm55_vm0 = vcmask 64512   ;;  %s63_s22 = int_to_ptr.vmem [resolvable:$true] %s62_s22 }
   0x9   :  { %v23_v9 = vld [vmem:[%s179_s1 + $0x30] sm:$0xff]  ;;  %v22_v10 = vld [vmem:[%s179_s1 + $0x28] sm:$0xff]  ;;  %v21_v11 = vld [vmem:[%s179_s1 + $0x20] sm:$0xff] }
   0xa   :  { %39 = vmatpush.msra.mxu0 %v28_v4  ;;  %v20_v12 = vld [vmem:[%s179_s1 + $0x18] sm:$0xff]  ;;  %v19_v13 = vld [vmem:[%s179_s1 + $0x10] sm:$0xff]  ;;  %v18_v14 = vld [vmem:[%s179_s1 + $0x8] sm:$0xff] }
   0xb   :  { %v17_v15 = vld [vmem:[%s179_s1] sm:$0xff] }
   0xc   :  { %40 = vmatpush.msra.mxu0 %v27_v5  ;;  %v16_v16 = vld [vmem:[%s178_s0] sm:$0xff] }
   0xe   :  { %41 = vmatpush.msra.mxu0 %v26_v6 }
  0x10   :  { %42 = vmatpush.msra.mxu0 %v25_v7 }
  0x12   :  { %43 = vmatpush.msra.mxu0 %v24_v8 }
  0x14   :  { %44 = vmatpush.msra.mxu0 %v23_v9 }
  0x16   :  { %45 = vmatpush.msra.mxu0 %v22_v10 }
  0x18   :  { %46 = vmatpush.msra.mxu0 %v21_v11 }
  0x1a   :  { %47 = vmatpush.msra.mxu0 %v20_v12 }
  0x1c   :  { %48 = vmatpush.msra.mxu0 %v19_v13 }
  0x1e   :  { %49 = vmatpush.msra.mxu0 %v18_v14 }
  0x20   :  { %50 = vmatpush.msra.mxu0 %v17_v15 }
  0x21   :  { %51 = vmatmul.f32.vlgmr.msra.gmra.mxu0 %v16_v16 }
  0x9e   :  { %v52_v18 = vpop.f32.mrf.mxu0 }
  0x9f   :  { %v53_v19 = vadd.f32 %v52_v18, %v34_v17 }
  0xa1   :  { %56 = vst.msk [vmem:[#allocation3] sm:$0xff] %vm55_vm0, %v53_v19 }
  0xa2   :  { %67 = dma.vmem_to_hbm [thread:$0]  %s63_s22, 128, %s65_s25, [#allocation4]  }
  0xa3   :  { %98 = dma.done.wait [#allocation4], 128  }
  0xa4   :  { %99 = vsyncadd [#allocation4], 4294967168 }
  0xa5   :  { %72 = vsyncpa [#allocation4], 1 }

</bundles_post_ra>
